<compile_context>
chip_gen: v7x
topology: tpu7x:2x2x1
jax: 0.10.0
libtpu: 0.0.40
codegen_flags: <defaults>
</compile_context>

<pallas_src>
import functools

import jax
import jax.numpy as jnp
from jax.experimental import pallas as pl
from jax.experimental.pallas import tpu as pltpu


def _qa_gnn_kernel(x_ref, mask_ref, adj_ref, wsa_ref, bself_ref, wraug_ref,
                   awm_ref, ab_ref, out_ref, *, num_relations, channels,
                   nodes, batch_block, mxu_dtype):
    """One grid step = `batch_block` graphs.

    x_ref    : (bt, N, C)      f32
    mask_ref : (bt, N, 1)      f32
    adj_ref  : (bt, R*N, N)    int8/f32, relation-stacked (native layout)
    wsa_ref  : (C, 2C)         f32   [W_self^T | att_W (x half)]
    bself_ref: (1, C)          f32
    wraug_ref: (R, C+2, C)     mxu_dtype  rows = [ms*W_r^T ; ms*b_r ; (1-ms)*repl]
    awm_ref  : (C, C)          f32   att_W (msg half)
    ab_ref   : (1, C)          f32
    out_ref  : (bt, N, C)      f32
    """
    R, C, N, bt = num_relations, channels, nodes, batch_block
    Caug = C + 2

    x = x_ref[...].reshape(bt * N, C)                      # (bt*N, C) f32
    mask = mask_ref[...].reshape(bt * N, 1)                # (bt*N, 1) f32

    # Fused x-side projection: [W_self^T | att_W_x] in ONE MXU matmul, sliced.
    p = jnp.dot(x, wsa_ref[...], preferred_element_type=jnp.float32)
    h_self = (p[:, :C] + bself_ref[...]) * mask            # (bt*N, C)
    att_x = p[:, C:]                                       # (bt*N, C)

    # Augmented adjacency operand [mask*x | mask | 1]: the mask column carries
    # the per-relation bias term and the ones column the replacement term, so
    # the dominant adjacency matmul also produces the folded bias/replacement
    # contributions (no row-sums, no separate bias path).
    xaug = jnp.concatenate([x * mask, mask, jnp.ones_like(mask)], axis=-1)
    xaug = xaug.reshape(bt, N, Caug).astype(mxu_dtype)

    # Dominant matmul: per-graph (R*N, N) @ (N, Caug), bf16 x bf16 -> f32 accum.
    adj = adj_ref[...].astype(jnp.float32).astype(mxu_dtype)      # (bt, R*N, N)
    a = jnp.einsum('bkn,bnc->bkc', adj, xaug,
                   preferred_element_type=jnp.float32)            # (bt, R*N, Caug)
    a = a.astype(mxu_dtype)

    # Weight contraction: msg = h_self + sum_r A_r @ [ms*W_r^T ; ms*b_r ; repl].
    # R matmuls over the flattened (bt*N, Caug) slab, f32 accumulation.
    # No (R*N, C) concat / sublane relayout of the largest intermediate.
    msg = h_self
    for r in range(R):
        a_r = a[:, r * N:(r + 1) * N, :].reshape(bt * N, Caug)
        msg = msg + jnp.dot(a_r, wraug_ref[r],
                            preferred_element_type=jnp.float32)

    # att = sigmoid([x, msg] @ att_W^T + att_b); x-half already in att_x.
    att = jax.nn.sigmoid(
        att_x + jnp.dot(msg, awm_ref[...], preferred_element_type=jnp.float32)
        + ab_ref[...])

    update = att * jnp.tanh(msg) + (1.0 - att) * x
    # TODO(synk): Dropout(0.2) is identity (eval mode); training-mode in-kernel
    # PRNG dropout is omitted.
    out_ref[...] = update.reshape(bt, N, C).astype(out_ref.dtype)


def qa_gnn_message_passer(x, adj_mat, mask, message_scale, message_replacement,
                          w_weight, w_bias, att_weight, att_bias, *,
                          batch_block=1, mxu_dtype=jnp.bfloat16,
                          adj_storage_dtype=jnp.int8, adj_is_binary=True,
                          vmem_limit_bytes=None):
    """Pallas wrapper for QaGnnMessagePasser.forward (eval mode).

    x: (B, N, C) f32; adj_mat: (B, R, N, N) f32 (0/1); mask: (B, N, 1) f32.
    w_weight: (C*(R+1), C) (PyTorch Linear layout); att_weight: (C, 2C).

    Tuning notes (perf review):
      * batch_block: choose so B % batch_block == 0, B//batch_block >= 2 (both
        v7x TensorCores), and batch_block*N >= 256 on v6e/v7x when VMEM allows.
      * adj_storage_dtype=int8 is exact only for 0/1 adjacency (adj_is_binary);
        non-binary adjacency falls back to f32 storage.
      * mxu_dtype=bfloat16 rounds x / neighbor-sums / relation weights before
        the MXU (f32 accumulation kept); use float32 for bit-accuracy checks.
    """
    B, N, C = x.shape
    R = adj_mat.shape[1]
    assert adj_mat.shape == (B, R, N, N)
    assert mask.shape == (B, N, 1)
    assert w_weight.shape == (C * (R + 1), C)
    assert w_bias.shape == (C * (R + 1),)
    assert att_weight.shape == (C, 2 * C)
    assert att_bias.shape == (C,)
    assert B % batch_block == 0
    bt = batch_block
    Caug = C + 2

    # PyTorch `message_scale is None` branch == scale 1, replacement 0 (exact).
    ms = 1.0 if message_scale is None else float(message_scale)
    if message_scale is None or message_replacement is None:
        repl = jnp.zeros((C,), jnp.float32)
    else:
        repl = (1.0 - ms) * jnp.asarray(message_replacement,
                                        jnp.float32).reshape(C)

    # Per-relation augmented weights: rows = [ms*W_r^T ; ms*b_r ; (1-ms)*repl].
    w3 = jnp.asarray(w_weight, jnp.float32).reshape(R + 1, C, C)   # (R+1,out,in)
    b2 = jnp.asarray(w_bias, jnp.float32).reshape(R + 1, C)
    wraug = jnp.concatenate(
        [ms * jnp.transpose(w3[:R], (0, 2, 1)),                   # (R, C, C)
         ms * b2[:R][:, None, :],                                  # (R, 1, C)
         jnp.broadcast_to(repl[None, None, :], (R, 1, C))],        # (R, 1, C)
        axis=1).astype(mxu_dtype)                                  # (R, C+2, C)

    # Fused x-side weights: [W_self^T | att_W (x half)]; kept f32 (tiny matmul).
    awt = jnp.asarray(att_weight, jnp.float32).T                   # (2C, C)
    wsa = jnp.concatenate([w3[R].T, awt[:C]], axis=1)              # (C, 2C)
    bself = b2[R].reshape(1, C)
    awm = awt[C:]                                                  # (C, C)
    ab = jnp.asarray(att_bias, jnp.float32).reshape(1, C)

    # Adjacency ships in its native relation-stacked layout (free reshape, no
    # transpose/relayout pass) and compressed storage.
    if (not adj_is_binary) and jnp.dtype(adj_storage_dtype) == jnp.dtype(jnp.int8):
        adj_storage_dtype = jnp.float32     # int8 storage exact only for 0/1
    adj_k = jnp.asarray(adj_mat).reshape(B, R * N, N).astype(adj_storage_dtype)

    x = jnp.asarray(x, jnp.float32)
    mask = jnp.asarray(mask, jnp.float32)

    # VMEM budget (double-buffered inputs/outputs + f32/bf16 copies of A).
    adj_item = jnp.dtype(adj_storage_dtype).itemsize
    adj_blk = bt * R * N * N * adj_item
    x_blk = bt * N * C * 4
    a_blk = bt * R * N * Caug * 4
    w_bytes = (wraug.size * jnp.dtype(mxu_dtype).itemsize
               + (wsa.size + awm.size + bself.size + ab.size) * 4)
    est = 2 * (adj_blk + 2 * x_blk + bt * N * 4) + 6 * a_blk + w_bytes + (1 << 20)
    if vmem_limit_bytes is None:
        # >= 32 MiB (scoped default), capped at 64 MiB for v7x's physical VMEM;
        # v5e/v6e can raise this toward ~100 MiB for large graphs.
        vmem_limit_bytes = int(min(64 * 2 ** 20, max(32 * 2 ** 20, 2 * est)))

    kernel = functools.partial(_qa_gnn_kernel, num_relations=R, channels=C,
                               nodes=N, batch_block=bt, mxu_dtype=mxu_dtype)

    flops = (2 * B * R * N * N * Caug          # adjacency contraction
             + 2 * B * R * N * Caug * C        # relation-weight contraction
             + 2 * B * N * C * 2 * C           # fused x projection
             + 2 * B * N * C * C               # attention (msg half)
             + 10 * B * N * C)                 # elementwise
    bytes_accessed = int(x.size * 4 + mask.size * 4 + adj_k.size * adj_item
                         + wraug.size * jnp.dtype(mxu_dtype).itemsize
                         + (wsa.size + awm.size + bself.size + ab.size) * 4
                         + B * N * C * 4)
    cost = pl.CostEstimate(flops=int(flops), transcendentals=int(3 * B * N * C),
                           bytes_accessed=bytes_accessed)

    out = pl.pallas_call(
        kernel,
        out_shape=jax.ShapeDtypeStruct((B, N, C), jnp.float32),
        grid=(B // bt,),
        in_specs=[
            pl.BlockSpec((bt, N, C), lambda i: (i, 0, 0)),          # x
            pl.BlockSpec((bt, N, 1), lambda i: (i, 0, 0)),          # mask
            pl.BlockSpec((bt, R * N, N), lambda i: (i, 0, 0)),      # adjacency
            pl.BlockSpec((C, 2 * C), lambda i: (0, 0)),             # [Wself^T|awx]
            pl.BlockSpec((1, C), lambda i: (0, 0)),                 # b_self
            pl.BlockSpec((R, Caug, C), lambda i: (0, 0, 0)),        # aug. rel W
            pl.BlockSpec((C, C), lambda i: (0, 0)),                 # att W (msg)
            pl.BlockSpec((1, C), lambda i: (0, 0)),                 # att bias
        ],
        out_specs=pl.BlockSpec((bt, N, C), lambda i: (i, 0, 0)),
        compiler_params=pltpu.CompilerParams(
            dimension_semantics=("parallel",),
            vmem_limit_bytes=vmem_limit_bytes),
        cost_estimate=cost,
    )(x, mask, adj_k, wsa, bself, wraug, awm, ab)
    return out


def _reference(x, adj, mask, message_scale, message_replacement,
               w_weight, w_bias, att_weight, att_bias):
    """Pure-JAX transcription of the PyTorch forward (eval mode)."""
    B, N, C = x.shape
    R = adj.shape[1]
    h = (x @ w_weight.T + w_bias).reshape(B, N, R + 1, C) * mask[:, :, None, :]
    h_msg = jnp.transpose(h[:, :, :R, :], (0, 2, 1, 3))              # (B,R,N,C)
    h_self = h[:, :, R, :]
    if message_scale is not None:
        msg = jnp.einsum('brij,brjc->bric', message_scale * adj, h_msg)
        if message_replacement is not None:
            repl_full = jnp.broadcast_to(
                message_replacement[None, None, None, :], (B, R, N, C))
            msg = msg + jnp.einsum('brij,brjc->bric',
                                   (1 - message_scale) * adj, repl_full)
    else:
        msg = jnp.einsum('brij,brjc->bric', adj, h_msg)
    msg = msg.sum(axis=1) + h_self
    att = jax.nn.sigmoid(jnp.concatenate([x, msg], -1) @ att_weight.T + att_bias)
    return att * jnp.tanh(msg) + (1 - att) * x


if __name__ == "__main__":
    B, N, C, R = 4, 16, 32, 3

    key = jax.random.PRNGKey(0)
    ks = jax.random.split(key, 8)

    def xavier(k, shape):  # (out, in)
        bound = (6.0 / (shape[0] + shape[1])) ** 0.5
        return jax.random.uniform(k, shape, jnp.float32, -bound, bound)

    w_weight = xavier(ks[0], (C * (R + 1), C))
    w_bias = jax.random.uniform(ks[1], (C * (R + 1),), jnp.float32, -0.05, 0.05)
    att_weight = xavier(ks[2], (C, 2 * C))
    att_bias = jax.random.uniform(ks[3], (C,), jnp.float32, -0.05, 0.05)

    x = jax.random.normal(ks[4], (B, N, C), jnp.float32)
    adj = (jax.random.uniform(ks[5], (B, R, N, N)) > 0.7).astype(jnp.float32)
    mask = (jax.random.uniform(ks[6], (B, N, 1)) > 0.2).astype(jnp.float32)
    message_scale = 0.7
    message_replacement = jax.random.normal(ks[7], (C,), jnp.float32)

    def check(out, ref, tol, name):
        out = jax.block_until_ready(out)
        err = float(jnp.max(jnp.abs(out - ref)))
        assert err <= tol, f"{name}: max abs err {err} > {tol}"

    ref_g = _reference(x, adj, mask, message_scale, message_replacement,
                       w_weight, w_bias, att_weight, att_bias)
    ref_ng = _reference(x, adj, mask, message_scale, None,
                        w_weight, w_bias, att_weight, att_bias)
    ref_p = _reference(x, adj, mask, None, None,
                       w_weight, w_bias, att_weight, att_bias)

    # Default fast path: int8 adjacency storage + bf16 MXU operands (f32 accum).
    out = qa_gnn_message_passer(x, adj, mask, message_scale, message_replacement,
                                w_weight, w_bias, att_weight, att_bias,
                                batch_block=2)
    check(out, ref_g, 1e-1, "gated+replacement (int8/bf16)")

    out_p = qa_gnn_message_passer(x, adj, mask, None, None,
                                  w_weight, w_bias, att_weight, att_bias,
                                  batch_block=1)
    check(out_p, ref_p, 1e-1, "ungated (int8/bf16)")

    # Bit-accuracy checks of the restructured algebra: f32 MXU operands/storage.
    out_e = qa_gnn_message_passer(x, adj, mask, message_scale, message_replacement,
                                  w_weight, w_bias, att_weight, att_bias,
                                  batch_block=2, mxu_dtype=jnp.float32,
                                  adj_storage_dtype=jnp.float32)
    check(out_e, ref_g, 2e-4, "gated+replacement (f32 exact)")

    out_ne = qa_gnn_message_passer(x, adj, mask, message_scale, None,
                                   w_weight, w_bias, att_weight, att_bias,
                                   batch_block=2, mxu_dtype=jnp.float32,
                                   adj_storage_dtype=jnp.float32)
    check(out_ne, ref_ng, 2e-4, "gated, no replacement (f32 exact)")

    out_pe = qa_gnn_message_passer(x, adj, mask, None, None,
                                   w_weight, w_bias, att_weight, att_bias,
                                   batch_block=1, mxu_dtype=jnp.float32,
                                   adj_storage_dtype=jnp.float32)
    check(out_pe, ref_p, 2e-4, "ungated (f32 exact)")

    print("KERNEL_OK")
</pallas_src>

<mosaic_0001>
module attributes {stable_mosaic.version = 11 : i64} {
  func.func @_qa_gnn_kernel(%arg0: i32, %arg1: memref<2x16x32xf32, #tpu.memory_space<vmem>>, %arg2: memref<2x16x1xf32, #tpu.memory_space<vmem>>, %arg3: memref<2x48x16xi8, #tpu.memory_space<vmem>>, %arg4: memref<32x64xf32, #tpu.memory_space<vmem>>, %arg5: memref<1x32xf32, #tpu.memory_space<vmem>>, %arg6: memref<3x34x32xbf16, #tpu.memory_space<vmem>>, %arg7: memref<32x32xf32, #tpu.memory_space<vmem>>, %arg8: memref<1x32xf32, #tpu.memory_space<vmem>>, %arg9: memref<2x16x32xf32, #tpu.memory_space<vmem>>) attributes {dimension_semantics = [#tpu.dimension_semantics<parallel>], iteration_bounds = array<i64: 2>, scalar_prefetch = 0 : i64, scratch_operands = 0 : i64, tpu.core_type = #tpu.core_type<tc>, window_params = [{transform_indices = @transform_0, window_bounds = array<i64: 2, 16, 32>}, {transform_indices = @transform_1, window_bounds = array<i64: 2, 16, 1>}, {transform_indices = @transform_2, window_bounds = array<i64: 2, 48, 16>}, {pipeline_mode = #tpu.pipeline_mode<synchronous>, transform_indices = @transform_3, window_bounds = array<i64: 32, 64>}, {pipeline_mode = #tpu.pipeline_mode<synchronous>, transform_indices = @transform_4, window_bounds = array<i64: 1, 32>}, {pipeline_mode = #tpu.pipeline_mode<synchronous>, transform_indices = @transform_5, window_bounds = array<i64: 3, 34, 32>}, {pipeline_mode = #tpu.pipeline_mode<synchronous>, transform_indices = @transform_6, window_bounds = array<i64: 32, 32>}, {pipeline_mode = #tpu.pipeline_mode<synchronous>, transform_indices = @transform_7, window_bounds = array<i64: 1, 32>}, {transform_indices = @transform_8, window_bounds = array<i64: 2, 16, 32>}]} {
    %c0 = arith.constant 0 : index
    %c0_0 = arith.constant 0 : index
    %c0_1 = arith.constant 0 : index
    %0 = vector.load %arg1[%c0, %c0_0, %c0_1] : memref<2x16x32xf32, #tpu.memory_space<vmem>>, vector<2x16x32xf32>
    %1 = vector.shape_cast %0 : vector<2x16x32xf32> to vector<32x32xf32>
    %c0_2 = arith.constant 0 : index
    %c0_3 = arith.constant 0 : index
    %c0_4 = arith.constant 0 : index
    %2 = vector.load %arg2[%c0_2, %c0_3, %c0_4] : memref<2x16x1xf32, #tpu.memory_space<vmem>>, vector<2x16x1xf32>
    %3 = vector.shape_cast %2 : vector<2x16x1xf32> to vector<32x1xf32>
    %c0_5 = arith.constant 0 : index
    %c0_6 = arith.constant 0 : index
    %4 = vector.load %arg4[%c0_5, %c0_6] : memref<32x64xf32, #tpu.memory_space<vmem>>, vector<32x64xf32>
    %cst = arith.constant dense<0.000000e+00> : vector<32x64xf32>
    %5 = tpu.matmul %1, %4, %cst {dimension_numbers = #tpu.dot_dimension_numbers<[1], [0], [0], [1], [0, 0, 1, 1], [], []>} : vector<32x32xf32>, vector<32x64xf32>, vector<32x64xf32> -> vector<32x64xf32>
    %6 = vector.extract_strided_slice %5 {offsets = [0, 0], sizes = [32, 32], strides = [1, 1]} : vector<32x64xf32> to vector<32x32xf32>
    %c0_7 = arith.constant 0 : index
    %c0_8 = arith.constant 0 : index
    %7 = vector.load %arg5[%c0_7, %c0_8] : memref<1x32xf32, #tpu.memory_space<vmem>>, vector<1x32xf32>
    %8 = vector.broadcast %7 : vector<1x32xf32> to vector<32x32xf32>
    %9 = arith.addf %6, %8 : vector<32x32xf32>
    %10 = vector.broadcast %3 : vector<32x1xf32> to vector<32x32xf32>
    %11 = arith.mulf %9, %10 : vector<32x32xf32>
    %12 = vector.extract_strided_slice %5 {offsets = [0, 32], sizes = [32, 32], strides = [1, 1]} : vector<32x64xf32> to vector<32x32xf32>
    %13 = vector.broadcast %3 : vector<32x1xf32> to vector<32x32xf32>
    %14 = arith.mulf %1, %13 : vector<32x32xf32>
    %cst_9 = arith.constant 1.000000e+00 : f32
    %15 = vector.broadcast %cst_9 : f32 to vector<32x1xf32>
    %16 = tpu.concatenate %14, %3, %15 in 1 : vector<32x32xf32>, vector<32x1xf32>, vector<32x1xf32> -> vector<32x34xf32>
    %17 = vector.shape_cast %16 : vector<32x34xf32> to vector<2x16x34xf32>
    %18 = arith.truncf %17 : vector<2x16x34xf32> to vector<2x16x34xbf16>
    %c0_10 = arith.constant 0 : index
    %c0_11 = arith.constant 0 : index
    %c0_12 = arith.constant 0 : index
    %19 = vector.load %arg3[%c0_10, %c0_11, %c0_12] : memref<2x48x16xi8, #tpu.memory_space<vmem>>, vector<2x48x16xi8>
    %20 = arith.sitofp %19 : vector<2x48x16xi8> to vector<2x48x16xf32>
    %21 = arith.truncf %20 : vector<2x48x16xf32> to vector<2x48x16xbf16>
    "tpu.trace_start"() <{level = 10 : i32, message = "bkn,bnc->bkc"}> : () -> ()
    %cst_13 = arith.constant dense<0.000000e+00> : vector<2x48x34xf32>
    %22 = tpu.matmul %21, %18, %cst_13 {dimension_numbers = #tpu.dot_dimension_numbers<[2], [1], [1], [2], [0, 0, 0, 1, 1, 2], [0], [0]>} : vector<2x48x16xbf16>, vector<2x16x34xbf16>, vector<2x48x34xf32> -> vector<2x48x34xf32>
    "tpu.trace_stop"() : () -> ()
    %23 = arith.truncf %22 : vector<2x48x34xf32> to vector<2x48x34xbf16>
    %24 = vector.extract_strided_slice %23 {offsets = [0, 0, 0], sizes = [2, 16, 34], strides = [1, 1, 1]} : vector<2x48x34xbf16> to vector<2x16x34xbf16>
    %25 = vector.shape_cast %24 : vector<2x16x34xbf16> to vector<32x34xbf16>
    %c0_14 = arith.constant 0 : index
    %c0_15 = arith.constant 0 : index
    %c0_16 = arith.constant 0 : index
    %26 = vector.load %arg6[%c0_14, %c0_15, %c0_16] : memref<3x34x32xbf16, #tpu.memory_space<vmem>>, vector<1x34x32xbf16>
    %27 = vector.shape_cast %26 : vector<1x34x32xbf16> to vector<34x32xbf16>
    %cst_17 = arith.constant dense<0.000000e+00> : vector<32x32xf32>
    %28 = tpu.matmul %25, %27, %cst_17 {dimension_numbers = #tpu.dot_dimension_numbers<[1], [0], [0], [1], [0, 0, 1, 1], [], []>} : vector<32x34xbf16>, vector<34x32xbf16>, vector<32x32xf32> -> vector<32x32xf32>
    %29 = arith.addf %11, %28 : vector<32x32xf32>
    %30 = vector.extract_strided_slice %23 {offsets = [0, 16, 0], sizes = [2, 16, 34], strides = [1, 1, 1]} : vector<2x48x34xbf16> to vector<2x16x34xbf16>
    %31 = vector.shape_cast %30 : vector<2x16x34xbf16> to vector<32x34xbf16>
    %c1 = arith.constant 1 : index
    %c0_18 = arith.constant 0 : index
    %c0_19 = arith.constant 0 : index
    %32 = vector.load %arg6[%c1, %c0_18, %c0_19] : memref<3x34x32xbf16, #tpu.memory_space<vmem>>, vector<1x34x32xbf16>
    %33 = vector.shape_cast %32 : vector<1x34x32xbf16> to vector<34x32xbf16>
    %cst_20 = arith.constant dense<0.000000e+00> : vector<32x32xf32>
    %34 = tpu.matmul %31, %33, %cst_20 {dimension_numbers = #tpu.dot_dimension_numbers<[1], [0], [0], [1], [0, 0, 1, 1], [], []>} : vector<32x34xbf16>, vector<34x32xbf16>, vector<32x32xf32> -> vector<32x32xf32>
    %35 = arith.addf %29, %34 : vector<32x32xf32>
    %36 = vector.extract_strided_slice %23 {offsets = [0, 32, 0], sizes = [2, 16, 34], strides = [1, 1, 1]} : vector<2x48x34xbf16> to vector<2x16x34xbf16>
    %37 = vector.shape_cast %36 : vector<2x16x34xbf16> to vector<32x34xbf16>
    %c2 = arith.constant 2 : index
    %c0_21 = arith.constant 0 : index
    %c0_22 = arith.constant 0 : index
    %38 = vector.load %arg6[%c2, %c0_21, %c0_22] : memref<3x34x32xbf16, #tpu.memory_space<vmem>>, vector<1x34x32xbf16>
    %39 = vector.shape_cast %38 : vector<1x34x32xbf16> to vector<34x32xbf16>
    %cst_23 = arith.constant dense<0.000000e+00> : vector<32x32xf32>
    %40 = tpu.matmul %37, %39, %cst_23 {dimension_numbers = #tpu.dot_dimension_numbers<[1], [0], [0], [1], [0, 0, 1, 1], [], []>} : vector<32x34xbf16>, vector<34x32xbf16>, vector<32x32xf32> -> vector<32x32xf32>
    %41 = arith.addf %35, %40 : vector<32x32xf32>
    %c0_24 = arith.constant 0 : index
    %c0_25 = arith.constant 0 : index
    %42 = vector.load %arg7[%c0_24, %c0_25] : memref<32x32xf32, #tpu.memory_space<vmem>>, vector<32x32xf32>
    %cst_26 = arith.constant dense<0.000000e+00> : vector<32x32xf32>
    %43 = tpu.matmul %41, %42, %cst_26 {dimension_numbers = #tpu.dot_dimension_numbers<[1], [0], [0], [1], [0, 0, 1, 1], [], []>} : vector<32x32xf32>, vector<32x32xf32>, vector<32x32xf32> -> vector<32x32xf32>
    %44 = arith.addf %12, %43 : vector<32x32xf32>
    %c0_27 = arith.constant 0 : index
    %c0_28 = arith.constant 0 : index
    %45 = vector.load %arg8[%c0_27, %c0_28] : memref<1x32xf32, #tpu.memory_space<vmem>>, vector<1x32xf32>
    %46 = vector.broadcast %45 : vector<1x32xf32> to vector<32x32xf32>
    %47 = arith.addf %44, %46 : vector<32x32xf32>
    %48 = arith.negf %47 : vector<32x32xf32>
    %49 = math.exp %48 : vector<32x32xf32>
    %cst_29 = arith.constant 1.000000e+00 : f32
    %50 = vector.broadcast %cst_29 : f32 to vector<32x32xf32>
    %51 = arith.addf %50, %49 : vector<32x32xf32>
    %52 = arith.divf %50, %51 : vector<32x32xf32>
    %53 = math.tanh %41 : vector<32x32xf32>
    %54 = arith.mulf %52, %53 : vector<32x32xf32>
    %cst_30 = arith.constant 1.000000e+00 : f32
    %55 = vector.broadcast %cst_30 : f32 to vector<32x32xf32>
    %56 = arith.subf %55, %52 : vector<32x32xf32>
    %57 = arith.mulf %56, %1 : vector<32x32xf32>
    %58 = arith.addf %54, %57 : vector<32x32xf32>
    %59 = vector.shape_cast %58 : vector<32x32xf32> to vector<2x16x32xf32>
    %c0_31 = arith.constant 0 : index
    %c0_32 = arith.constant 0 : index
    %c0_33 = arith.constant 0 : index
    %60 = vector.load %arg9[%c0_31, %c0_32, %c0_33] : memref<2x16x32xf32, #tpu.memory_space<vmem>>, vector<2x16x32xf32>
    tpu.vector_store %arg9[%c0_31, %c0_32, %c0_33], %59 {strides = array<i32>} : memref<2x16x32xf32, #tpu.memory_space<vmem>>, vector<2x16x32xf32>,
    return
  }
  func.func @transform_0(%arg0: i32) -> (i32, i32, i32) {
    %c0_i32 = arith.constant 0 : i32
    %c0_i32_0 = arith.constant 0 : i32
    %c0_i32_1 = arith.constant 0 : i32
    return %arg0, %c0_i32, %c0_i32_0 : i32, i32, i32
  }
  func.func @transform_1(%arg0: i32) -> (i32, i32, i32) {
    %c0_i32 = arith.constant 0 : i32
    %c0_i32_0 = arith.constant 0 : i32
    %c0_i32_1 = arith.constant 0 : i32
    return %arg0, %c0_i32, %c0_i32_0 : i32, i32, i32
  }
  func.func @transform_2(%arg0: i32) -> (i32, i32, i32) {
    %c0_i32 = arith.constant 0 : i32
    %c0_i32_0 = arith.constant 0 : i32
    %c0_i32_1 = arith.constant 0 : i32
    return %arg0, %c0_i32, %c0_i32_0 : i32, i32, i32
  }
  func.func @transform_3(%arg0: i32) -> (i32, i32) {
    %c0_i32 = arith.constant 0 : i32
    %c0_i32_0 = arith.constant 0 : i32
    %c0_i32_1 = arith.constant 0 : i32
    return %c0_i32, %c0_i32_0 : i32, i32
  }
  func.func @transform_4(%arg0: i32) -> (i32, i32) {
    %c0_i32 = arith.constant 0 : i32
    %c0_i32_0 = arith.constant 0 : i32
    %c0_i32_1 = arith.constant 0 : i32
    return %c0_i32, %c0_i32_0 : i32, i32
  }
  func.func @transform_5(%arg0: i32) -> (i32, i32, i32) {
    %c0_i32 = arith.constant 0 : i32
    %c0_i32_0 = arith.constant 0 : i32
    %c0_i32_1 = arith.constant 0 : i32
    %c0_i32_2 = arith.constant 0 : i32
    return %c0_i32, %c0_i32_0, %c0_i32_1 : i32, i32, i32
  }
  func.func @transform_6(%arg0: i32) -> (i32, i32) {
    %c0_i32 = arith.constant 0 : i32
    %c0_i32_0 = arith.constant 0 : i32
    %c0_i32_1 = arith.constant 0 : i32
    return %c0_i32, %c0_i32_0 : i32, i32
  }
  func.func @transform_7(%arg0: i32) -> (i32, i32) {
    %c0_i32 = arith.constant 0 : i32
    %c0_i32_0 = arith.constant 0 : i32
    %c0_i32_1 = arith.constant 0 : i32
    return %c0_i32, %c0_i32_0 : i32, i32
  }
  func.func @transform_8(%arg0: i32) -> (i32, i32, i32) {
    %c0_i32 = arith.constant 0 : i32
    %c0_i32_0 = arith.constant 0 : i32
    %c0_i32_1 = arith.constant 0 : i32
    return %arg0, %c0_i32, %c0_i32_0 : i32, i32, i32
  }
}

</mosaic_0001>

<bundles_post_ra>
// kernel: tpu_custom_call.1
= control target key start
LH: loop header
LB: loop body
LE: loop exit
PB: predicated region body
PF: predicated region fallthrough
CT: control target
= control target key end

     0   :  { %13 = vsyncpa [#allocation3], 0  ;;  %s2047_s0 = inlined_call_operand.vmem [shape: f32[4,16,32], index: 0, kind: input, shape index: {}]   ;;  %s2048_s1 = inlined_call_operand.vmem [shape: f32[4,16,1], index: 1, kind: input, shape index: {}]   ;;  %s2049_s2 = inlined_call_operand.vmem [shape: s8[4,48,16], index: 2, kind: input, shape index: {}]   ;;  %s2050_s3 = inlined_call_operand.vmem [shape: f32[32,64], index: 3, kind: input, shape index: {}]   ;;  %s2051_s4 = inlined_call_operand.vmem [shape: f32[1,32], index: 4, kind: input, shape index: {}]   ;;  %s2052_s5 = inlined_call_operand.vmem [shape: bf16[3,34,32], index: 5, kind: input, shape index: {}]   ;;  %s2053_s6 = inlined_call_operand.vmem [shape: f32[32,32], index: 6, kind: input, shape index: {}]   ;;  %s2054_s7 = inlined_call_operand.vmem [shape: f32[1,32], index: 7, kind: input, shape index: {}]   ;;  %s2055_s8 = inlined_call_operand.hbm [shape: f32[4,16,32], index: 8, kind: output, shape index: {}]  }
   0x1   :  { %15 = vsyncpa [#allocation3 + $0x1], 0  ;;  %s1744_s27 = smov 0   ;;  %s1746_s28 = smov 0  }
   0x2   :  { %s1748_s29 = smov 0   ;;  %s1750_s30 = smov 0  }
   0x3 LB: > { %s1765_s9 = sadd.s32 4294967295, %s1689_s30   ;;  %s1303_s10 = sadd.s32 4294967294, %s1689_s30   ;;  %s1689_s30 = sphi %s1750_s30, %s2061_s30   ;;  %s1685_s29 = sphi %s1748_s29, %s2060_s29   ;;  %s1681_s28 = sphi %s1746_s28, %s2059_s28   ;;  %s1677_s27 = sphi %s1744_s27, %s2058_s27  }
   0x4   : > { %s1769_s11 = sadd.s32 1, %s1689_s30   ;;  %s211_s12 = sadd.s32 1, %s1685_s29 }
   0x5   : > { %s208_s13 = ssub.s32 %s1689_s30, %s1769_s11  ;;  %p221_p0 = scmp.ne.s32.totalorder %s1685_s29, %s1681_s28 }
   0x6   : > { %p209_p1 = scmp.eq.s32.totalorder %s208_s13, 0  ;;  %p222_p2 = scmp.eq.s32.totalorder %s1765_s9, 1 }
   0x7   : > { %p227_p3 = scmp.ne.s32.totalorder %s1681_s28, %s1677_s27  ;;  %p228_p4 = scmp.eq.s32.totalorder %s1303_s10, 1 }
   0x8   : > { %s1780_s14 = scalar_select %p209_p1, %s1685_s29, %s211_s12  }
   0x9   : > { %p1782_p5 = por %p222_p2, %p221_p0  ;;  %p1786_p6 = por %p228_p4, %p227_p3 }
   0xa   : > { %p1306_p7 = scmp.ge.s32.totalorder %s1689_s30, 1  ;;  %p291_p8 = scmp.lt.s32.totalorder %s1689_s30, 3 }
   0xc   : > { %p292_p9 = pnand %p1306_p7, %p291_p8 }
   0xd   : > { %v369_v0 = vld [vmem:[%s2050_s3] sm:$0xff] (!%p292_p9)  ;;  %v370_v1 = vld [vmem:[%s2050_s3 + $0x8] sm:$0xff] (!%p292_p9)  ;;  %v371_v2 = vld [vmem:[%s2050_s3 + $0x10] sm:$0xff] (!%p292_p9)  ;;  %s1308_s23 = sshll.u32 (!%p292_p9), %s1765_s9, 1  ;;  %v1691_v4 = vmov (!%p292_p9), 0   ;;  %vm373_vm0 = vcmask (!%p292_p9), 261120  }
   0xe   : > { %295 = sbr.rel (%p292_p9) target bundleno = 1140 (0x474), region = 52  ;;  %v1502_v3 = vpack.c.bf16 (!%p292_p9), %v370_v1, %v369_v0  ;;  %1583 = vset.pattern.permute.xlu1 (!%p292_p9), %v1691_v4  ;;  %1582 = vset.pattern.permute.xlu0 (!%p292_p9), %v1691_v4  ;;  %v372_v5 = vld [vmem:[%s2050_s3 + $0x18] sm:$0xff] (!%p292_p9)  ;;  %p339_p10 = scmp.lt.s32.totalorder (!%p292_p9), %s1308_s23, 3  ;;  %v1693_v17 = vmov (!%p292_p9), 0.0   ;;  %vm1694_vm1 = vmmov (!%p292_p9), 0   ;;  %vm526_vm2 = vcmask (!%p292_p9), 269312  }
   0xf   : > { %v1506_v6 = vpack.c.bf16 (!%p292_p9), %v372_v5, %v371_v2  ;;  %s1692_s20 = smov (!%p292_p9), 32   ;;  %1518 = vmatprep.subr.bf16.mxu1 (!%p292_p9), %v1693_v17  ;;  %1436 = vmatprep.mubr.msk.bf16.mxu1 (!%p292_p9), %vm1694_vm1, %v1693_v17  ;;  %v1594_v46 = vld [vmem:[%s2052_s5] sm:$0xff] (!%p292_p9)   ;;  %vm572_vm3 = vcmask (!%p292_p9), 130048   ;;  %vm753_vm4 = vcmask (!%p292_p9), 1040384   ;;  %vm746_vm5 = vcmask (!%p292_p9), 277504   ;;  %s335_s18 = sand.u32 (!%p292_p9), 1, %s1681_s28  }
  0x10   : > { %1503 = vmatprep.subr.bf16.mxu0 (!%p292_p9), %v1502_v3  ;;  %s1376_s24 = sshll.u32 (!%p292_p9), %s1765_s9, 9  ;;  %s2006_s10 = scalar_lea.sflag (!%p292_p9), [#allocation3], %s335_s18 }
  0x11   : > { %1505 = vmatpush3.bf16.msra.mxu0 (!%p292_p9), %v1502_v3  ;;  %s1696_s12 = smov (!%p292_p9), [#allocation2]  }
  0x12   : > { %1507 = vmatprep.subr.bf16.mxu0 (!%p292_p9), %v1506_v6 }
  0x15   : > { %s2063_s23 = smov (!%p339_p10, %s1308_s23), 3  ;;  %1509 = vmatpush3.bf16.msra.mxu0 %v1506_v6 }
  0x16   : > { %s1373_s26 = sshll.u32 %s2063_s23, 4  ;;  %1430 = vmatprep.subr.bf16.mxu0 %v1693_v17  ;;  %s1535_s21 = smul.u32 12, %s2063_s23 }
  0x17   : > { %s350_s13 = scalar_lea.vmem %s2048_s1, %s1373_s26  ;;  %s343_s19 = scalar_lea.vmem %s2047_s0, %s1373_s26 }
  0x18   : > { %v367_v7 = vld [vmem:[%s350_s13 + $0x10] sm:$0xff]  ;;  %v365_v8 = vld [vmem:[%s350_s13] sm:$0xff]  ;;  %v1816_v10 = vld [vmem:[%s343_s19 + $0x8] sm:$0xff]  ;;  %s1846_s25 = scalar_lea.vmem %s2049_s2, %s1535_s21  ;;  %s2002_s26 = scalar_lea.hbm %s2055_s8, %s1376_s24 }
  0x19   : > { %494 = vperm.xlu1 %1583, %v367_v7   ;;  %v1814_v9 = vld [vmem:[%s343_s19] sm:$0xff]  ;;  %v368_v11 = vld [vmem:[%s350_s13 + $0x18] sm:$0xff]  ;;  %484 = vperm.xlu0 %1582, %v365_v8   ;;  %v1820_v12 = vld [vmem:[%s343_s19 + $0x10] sm:$0xff] }
  0x1a   : > { %1424 = vmatprep.mubr.msk.f32.mxu0 %vm373_vm0, %v1814_v9  ;;  %v366_v13 = vld [vmem:[%s350_s13 + $0x8] sm:$0xff]  ;;  %v1589_v14 = vpack.i.bf16 %v368_v11, %v367_v7  ;;  %v1826_v15 = vld [vmem:[%s343_s19 + $0x18] sm:$0xff]  ;;  %v533_v22 = vld [vmem:[%s1846_s25] sm:$0x3]  ;;  %s1307_s19 = sshll.u32 %s335_s18, 5  ;;  %s1631_s13 = sshll.u32 %s1696_s12, 4  ;;  %s1632_s13 = int_to_ptr.vmem [resolvable:$false] %s1631_s13 }
  0x1b   : > { %1425 = vmatmul.mubr.msk.f32.vlgmr.msra.gmra.mrb[0].mxu0 %vm373_vm0, %v1816_v10  ;;  %v1584_v16 = vpack.i.bf16 %v366_v13, %v365_v8  ;;  %v534_v26 = vld [vmem:[%s1846_s25 + $0x2] sm:$0x3]  ;;  %v535_v27 = vld [vmem:[%s1846_s25 + $0x4] sm:$0x3]  ;;  %v536_v28 = vld [vmem:[%s1846_s25 + $0x6] sm:$0x3]  ;;  %v545_v36 = vunpack.c.l.s8.bf16 %v533_v22 }
  0x1c   : > { %1427 = vmatprep.mubr.msk.f32.mxu0 %vm373_vm0, %v1820_v12  ;;  %v546_v37 = vunpack.c.l.s8.bf16 %v534_v26  ;;  %v547_v38 = vunpack.c.l.s8.bf16 %v535_v27  ;;  %v548_v39 = vunpack.c.l.s8.bf16 %v536_v28  ;;  %v539_v51 = vld [vmem:[%s1846_s25 + $0xc] sm:$0x3]  ;;  %v540_v53 = vld [vmem:[%s1846_s25 + $0xe] sm:$0x3]  ;;  %v537_v54 = vld [vmem:[%s1846_s25 + $0x8] sm:$0x3] }
  0x1d   : > { %499 = vperm.xlu1 %1583, %v368_v11   ;;  %489 = vperm.xlu0 %1582, %v366_v13   ;;  %v538_v55 = vld [vmem:[%s1846_s25 + $0xa] sm:$0x3]  ;;  %v551_v57 = vunpack.c.l.s8.bf16 %v539_v51  ;;  %v552_v58 = vunpack.c.l.s8.bf16 %v540_v53  ;;  %v549_v59 = vunpack.c.l.s8.bf16 %v537_v54  ;;  %v541_v63 = vld [vmem:[%s1846_s25 + $0x10] sm:$0x3]  ;;  %v542_v0 = vld [vmem:[%s1846_s25 + $0x12] sm:$0x3] }
  0x1e   : > { %v1321_v50 = vcombine.low %v545_v36, %v546_v37  ;;  %v1322_v52 = vcombine.low %v547_v38, %v548_v39  ;;  %v550_v60 = vunpack.c.l.s8.bf16 %v538_v55  ;;  %v553_v1 = vunpack.c.l.s8.bf16 %v541_v63  ;;  %v543_v4 = vld [vmem:[%s1846_s25 + $0x14] sm:$0x3]  ;;  %v544_v5 = vld [vmem:[%s1846_s25 + $0x16] sm:$0x3]  ;;  %v1595_v22 = vld [vmem:[%s2052_s5 + $0x8] sm:$0xff]   ;;  %s337_s21 = scalar_lea.vmem [#allocation2], %s1307_s19 }
  0x1f   : > { %1428 = vmatmul.mubr.msk.f32.gmra.mrb[2].mxu0 %vm373_vm0, %v1826_v15  ;;  %v1327_v61 = vcombine.low %v551_v57, %v552_v58  ;;  %v554_v2 = vunpack.c.l.s8.bf16 %v542_v0  ;;  %v555_v6 = vunpack.c.l.s8.bf16 %v543_v4  ;;  %v556_v7 = vunpack.c.l.s8.bf16 %v544_v5  ;;  %v977_v26 = vld [vmem:[%s2053_s6 + $0x8] sm:$0xff]  ;;  %v978_v27 = vld [vmem:[%s2053_s6 + $0x10] sm:$0xff]  ;;  %v1602_v0 = vld [vmem:[%s2052_s5 + $0x38] ss:$0 sps:$4 sm:$0x11]   ;;  %s1217_s22 = sshll.u32 %s337_s21, 4  ;;  %s1997_s22 = int_to_ptr.vmem [resolvable:$true] %s1217_s22 }
  0x20   : > { %1432 = vmatprep.mubr.msk.bf16.mxu0 %vm1694_vm1, %v1693_v17  ;;  %v1323_v62 = vcombine.low %v549_v59, %v550_v60  ;;  %v1600_v59 = vld [vmem:[%s2052_s5 + $0x28] sm:$0xff]   ;;  %v1601_v60 = vld [vmem:[%s2052_s5 + $0x30] sm:$0xff]   ;;  %v1320_v4 = vld [vmem:[%s2051_s4] ss:$0 sm:$0xff]  ;;  %s1627_s9 = scalar_lea.vmem %s1997_s22, 512  ;;  %s1633_s17 = scalar_lea.vmem %s1632_s13, 1024 }
  0x21   : > { %1590 = vrot.lane.b32.xlu1 %v1589_v14, %s1692_s20  ;;  %1585 = vrot.lane.b32.xlu0 %v1584_v16, %s1692_s20  ;;  %v1328_v3 = vcombine.low %v553_v1, %v554_v2  ;;  %v1329_v8 = vcombine.low %v555_v6, %v556_v7  ;;  %p1628_p11 = scmp.ne.s32.totalorder %s1997_s22, %s1627_s9  ;;  %p1634_p0 = scmp.lt.s32.totalorder %s1997_s22, %s1632_s13 }
  0x22   : > { %p1635_p1 = scmp.lt.s32.totalorder %s1633_s17, %s1627_s9 }
  0x23   : > { %p1629_p12 = pnand %p1628_p11, %p1782_p5 }
  0x24   : > { %p1636_p2 = por %p1635_p1, %p1634_p0 }
  0x25   : > { %p1630_p13 = pneg %p1629_p12 }
  0x27   : > { %p1637_p3 = pnand %p1636_p2, %p1630_p13 }
  0x98   : > { %v1839_v18 = vpop.permute.xlu1 %494  ;;  %v1841_v19 = vpop.permute.xlu0 %484 }
  0x99   : > { %v508_v23 = vmul.f32 %v1839_v18, %v1820_v12  ;;  %v506_v32 = vmul.f32 %v1841_v19, %v1814_v9 }
  0x9c   : > { %v1848_v20 = vpop.permute.xlu1 %499  ;;  %v1850_v21 = vpop.permute.xlu0 %489 }
  0x9d   : > { %v509_v24 = vmul.f32 %v1848_v20, %v1826_v15  ;;  %v507_v33 = vmul.f32 %v1850_v21, %v1816_v10 }
  0xa0   : > { %v1591_v25 = vpop.permute.xlu1 %1590  ;;  %v1586_v31 = vpop.permute.xlu0 %1585 }
  0xa1   : > { %v1593_v29 = vunpack.i.h.bf16 %v1591_v25  ;;  %v1592_v30 = vunpack.i.l.bf16 %v1591_v25  ;;  %v1588_v34 = vunpack.i.h.bf16 %v1586_v31  ;;  %v1587_v35 = vunpack.i.l.bf16 %v1586_v31  ;;  %v976_v25 = vld [vmem:[%s2053_s6] sm:$0xff] }
  0xa2   : > { %v1510_v28 = vpack.c.bf16 %v977_v26, %v976_v25 }
  0xa3   : > { %v524_v40 = vsel %vm373_vm0, %v508_v23, %v1592_v30  ;;  %v525_v41 = vsel %vm373_vm0, %v509_v24, %v1593_v29  ;;  %v522_v42 = vsel %vm373_vm0, %v506_v32, %v1587_v35  ;;  %v523_v43 = vsel %vm373_vm0, %v507_v33, %v1588_v34  ;;  %v1597_v24 = vld [vmem:[%s2052_s5 + $0x14] sm:$0xff]  }
  0xa4   : > { %v527_v44 = vsel %vm526_vm2, %v522_v42, 1.0  ;;  %v528_v45 = vsel %vm526_vm2, %v523_v43, 1.0  ;;  %v529_v48 = vsel %vm526_vm2, %v524_v40, 1.0  ;;  %v530_v49 = vsel %vm526_vm2, %v525_v41, 1.0  ;;  %v979_v29 = vld [vmem:[%s2053_s6 + $0x18] sm:$0xff] }
  0xa5   : > { %v531_v47 = vpack.c.bf16 %v528_v45, %v527_v44  ;;  %v532_v56 = vpack.c.bf16 %v530_v49, %v529_v48  ;;  %v1514_v30 = vpack.c.bf16 %v979_v29, %v978_v27  ;;  %v1598_v49 = vld [vmem:[%s2052_s5 + $0x1c] sm:$0xff]  }
  0xa7   : > { %1431 = vmatpush3.bf16.msra.mxu0 %v531_v47  ;;  %1519 = vmatpush3.bf16.msra.mxu1 %v531_v47 }
  0xa8   : > { %1444 = vmatprep.subr.bf16.mxu0 %v1693_v17  ;;  %1458 = vmatprep.subr.bf16.mxu1 %v1594_v46 }
  0xaa   : > { %1433 = vmatmul.mubr.msk.bf16.vlgmr.msra.gmra.mrb[4].mxu0 %vm572_vm3, %v1321_v50  ;;  %1437 = vmatmul.mubr.msk.bf16.vlgmr.msra.gmra.mrb[0].mxu1 %vm572_vm3, %v1322_v52  ;;  %v1599_v52 = vld [vmem:[%s2052_s5 + $0x24] ss:$0 sps:$4 sm:$0x11]  }
  0xab   : > { %1445 = vmatpush3.bf16.msra.mxu0 %v532_v56  ;;  %1446 = vmatprep.mubr.msk.bf16.mxu0 %vm1694_vm1, %v1693_v17  ;;  %v838_v57 = vsel %vm753_vm4, %v1599_v52, 0 }
  0xac   : > { %1440 = vmatprep.mubr.msk.bf16.mxu1 %vm1694_vm1, %v1693_v17  ;;  %1459 = vmatpush3.bf16.msra.mxu1 %v1594_v46 }
  0xad   : > { %1460 = vmatprep.subr.bf16.mxu1 %v1595_v22  ;;  %1511 = vmatprep.subr.bf16.mxu0 %v1510_v28 }
  0xb0   : > { %1461 = vmatpush3.bf16.msra.mxu1 %v1595_v22 }
  0xb2   : > { %1447 = vmatmul.mubr.msk.bf16.vlgmr.msra.gmra.mrb[8].mxu0 %vm572_vm3, %v1327_v61  ;;  %1441 = vmatmul.mubr.msk.bf16.gmra.mrb[4].mxu1 %vm572_vm3, %v1323_v62 }
  0xb3   : > { %1450 = vmatprep.mubr.msk.bf16.mxu0 %vm1694_vm1, %v1693_v17  ;;  %1513 = vmatpush3.bf16.msra.mxu0 %v1510_v28 }
  0xb4   : > { %1515 = vmatprep.subr.bf16.mxu0 %v1514_v30 }
  0xb7   : > { %1517 = vmatpush3.bf16.msra.mxu0 %v1514_v30 }
  0xba   : > { %1451 = vmatmul.mubr.msk.bf16.gmra.mrb[12].mxu0 %vm572_vm3, %v1328_v3  ;;  %v921_v3 = vsel %vm753_vm4, %v1602_v0, 0 }
  0xbb   : > { %1454 = vmatprep.mubr.msk.bf16.mxu0 %vm1694_vm1, %v1693_v17  ;;  %v1596_v17 = vld [vmem:[%s2052_s5 + $0x10] ss:$0 sps:$4 sm:$0x11]  }
  0xbc   : > { %1532 = vmatprep.subr.msk.bf16.mxu1 %vm753_vm4, %v1596_v17  ;;  %v755_v23 = vsel %vm753_vm4, %v1596_v17, 0 }
  0xbd   : > { %1463 = vmatpush3.bf16.msra.mxu1 %v755_v23 }
  0xbe   : > { %1468 = vmatprep.subr.bf16.mxu1 %v1597_v24 }
  0xc2   : > { %1455 = vmatmul.mubr.msk.bf16.gmra.mrb[16].mxu0 %vm572_vm3, %v1329_v8 }
  0xee   : > { %v1898_v11 = vpop.f32.mrb[0].mxu0 }
  0xef   : > { %v1900_v13 = vpop.f32.mrb[1].mxu0  ;;  %v479_v8 = vadd.f32 %v1898_v11, %v1320_v4 }
  0xf0   : > { %v478_v6 = vadd.f32 %v1320_v4, %v1900_v13 }
  0xf1   : > { %v503_v29 = vmul.f32 %v1850_v21, %v479_v8 }
  0xf2   : > { %v1902_v14 = vpop.f32.mrb[2].mxu0  ;;  %v502_v23 = vmul.f32 %v1841_v19, %v478_v6 }
  0xf3   : > { %v1904_v16 = vpop.f32.mrb[3].mxu0  ;;  %v481_v7 = vadd.f32 %v1902_v14, %v1320_v4 }
  0xf4   : > { %v480_v5 = vadd.f32 %v1320_v4, %v1904_v16 }
  0xf5   : > { %v505_v26 = vmul.f32 %v1848_v20, %v481_v7 }
  0xf6   : > { %v504_v22 = vmul.f32 %v1839_v18, %v480_v5 }
 0x17d   : > { %v616_v31 = vpop.f32.mrb[4].mxu0  ;;  %v624_v32 = vpop.f32.mrb[0].mxu1 }
 0x17e   : > { %v1434_v33 = vpop.f32.mrb[5].mxu0  ;;  %v1438_v34 = vpop.f32.mrb[1].mxu1 }
 0x17f   : > { %v619_v35 = vpop.f32.mrb[6].mxu0  ;;  %v627_v36 = vpop.f32.mrb[2].mxu1  ;;  %v1362_v33 = vld [vmem:[%s2054_s7] ss:$0 sm:$0xff] }
 0x180   : > { %v720_v37 = vpack.c.bf16 %v619_v35, %v616_v31  ;;  %v1435_v38 = vpop.f32.mrb[7].mxu0  ;;  %v721_v39 = vpack.c.bf16 %v627_v36, %v624_v32  ;;  %v1439_v40 = vpop.f32.mrb[3].mxu1 }
 0x182   : > { %1464 = vmatprep.mubr.msk.bf16.mxu1 %vm746_vm5, %v720_v37 }
 0x185   : > { %v697_v41 = vpop.f32.mrb[8].mxu0  ;;  %v632_v42 = vpop.f32.mrb[4].mxu1 }
 0x186   : > { %v1448_v43 = vpop.f32.mrb[9].mxu0  ;;  %v1442_v44 = vpop.f32.mrb[5].mxu1 }
 0x187   : > { %v700_v45 = vpop.f32.mrb[10].mxu0  ;;  %v635_v46 = vpop.f32.mrb[6].mxu1 }
 0x188   : > { %v723_v47 = vpack.c.bf16 %v700_v45, %v697_v41  ;;  %v1449_v48 = vpop.f32.mrb[11].mxu0  ;;  %v722_v50 = vpack.c.bf16 %v635_v46, %v632_v42  ;;  %v1443_v51 = vpop.f32.mrb[7].mxu1 }
 0x18a   : > { %1465 = vmatmul.mubr.msk.bf16.vlgmr.msra.gmra.mrb[8].mxu1 %vm746_vm5, %v723_v47 }
 0x18b   : > { %1469 = vmatpush3.bf16.msra.mxu1 %v1597_v24  ;;  %1474 = vmatprep.mubr.msk.bf16.mxu1 %vm746_vm5, %v721_v39 }
 0x18c   : > { %1470 = vmatprep.subr.bf16.mxu1 %v1598_v49 }
 0x18d   : > { %v705_v53 = vpop.f32.mrb[12].mxu0 }
 0x18e   : > { %v1452_v54 = vpop.f32.mrb[13].mxu0 }
 0x18f   : > { %1471 = vmatpush3.bf16.msra.mxu1 %v1598_v49  ;;  %v708_v55 = vpop.f32.mrb[14].mxu0 }
 0x190   : > { %1533 = vmatprep.subr.msk.bf16.mxu1 %vm753_vm4, %v1599_v52  ;;  %v724_v56 = vpack.c.bf16 %v708_v55, %v705_v53  ;;  %v1453_v58 = vpop.f32.mrb[15].mxu0 }
 0x193   : > { %1473 = vmatpush3.bf16.msra.mxu1 %v838_v57 }
 0x194   : > { %1478 = vmatprep.subr.bf16.mxu1 %v1600_v59 }
 0x195   : > { %v713_v61 = vpop.f32.mrb[16].mxu0 }
 0x196   : > { %1475 = vmatmul.mubr.msk.bf16.vlgmr.msra.gmra.mrb[8].mxu1 %vm746_vm5, %v724_v56  ;;  %v1456_v62 = vpop.f32.mrb[17].mxu0 }
 0x197   : > { %1479 = vmatpush3.bf16.msra.mxu1 %v1600_v59  ;;  %v716_v63 = vpop.f32.mrb[18].mxu0  ;;  %1484 = vmatprep.mubr.msk.bf16.mxu1 %vm746_vm5, %v722_v50 }
 0x198   : > { %1480 = vmatprep.subr.bf16.mxu1 %v1601_v60  ;;  %v725_v1 = vpack.c.bf16 %v716_v63, %v713_v61  ;;  %v1457_v2 = vpop.f32.mrb[19].mxu0 }
 0x19b   : > { %1481 = vmatpush3.bf16.msra.mxu1 %v1601_v60 }
 0x19c   : > { %1534 = vmatprep.subr.msk.bf16.mxu1 %vm753_vm4, %v1602_v0 }
 0x19f   : > { %1483 = vmatpush3.bf16.msra.mxu1 %v921_v3 }
 0x1a2   : > { %1485 = vmatmul.mubr.msk.bf16.vlgmr.msra.gmra.mrb[8].mxu1 %vm746_vm5, %v725_v1 }
 0x275   : > { %v1486_v17 = vpop.f32.mrb[8].mxu1 }
 0x276   : > { %v1520_v24 = vadd.f32 %v1486_v17, %v504_v22  ;;  %v957_v25 = vpop.f32.mrb[9].mxu1 }
 0x277   : > { %v1521_v27 = vadd.f32 %v957_v25, %v502_v23  ;;  %v1487_v28 = vpop.f32.mrb[10].mxu1 }
 0x278   : > { %v1522_v30 = vadd.f32 %v1487_v28, %v505_v26  ;;  %v960_v31 = vpop.f32.mrb[11].mxu1 }
 0x279   : > { %v1523_v32 = vadd.f32 %v960_v31, %v503_v29  ;;  %1496 = vmatprep.mubr.msk.f32.mxu0 %vm373_vm0, %v1521_v27  ;;  %1603 = vtanh.f32 %v1521_v27 }
 0x27a   : > { %1605 = vtanh.f32 %v1520_v24 }
 0x27b   : > { %1497 = vmatmul.mubr.msk.f32.vlgmr.msra.gmra.mrb[20].mxu0 %vm373_vm0, %v1523_v32  ;;  %1607 = vtanh.f32 %v1523_v32 }
 0x27c   : > { %1499 = vmatprep.mubr.msk.f32.mxu0 %vm373_vm0, %v1520_v24  ;;  %1609 = vtanh.f32 %v1522_v30 }
 0x27f   : > { %1500 = vmatmul.mubr.msk.f32.gmra.mrb[22].mxu0 %vm373_vm0, %v1522_v30 }
 0x283   : > { %v1604_v34 = vpop.eup %1603 }
 0x284   : > { %v1606_v35 = vpop.eup %1605 }
 0x285   : > { %v1608_v36 = vpop.eup %1607 }
 0x286   : > { %v1610_v37 = vpop.eup %1609 }
 0x34e   : > { %v1498_v18 = vpop.f32.mrb[20].mxu0 }
 0x34f   : > { %1083 = vrot.lane.b32.xlu1 %v1498_v18, %s1692_s20  ;;  %v1058_v19 = vpop.f32.mrb[21].mxu0 }
 0x350   : > { %1081 = vrot.lane.b32.xlu0 %v1058_v19, %s1692_s20 }
 0x352   : > { %v1501_v20 = vpop.f32.mrb[22].mxu0 }
 0x353   : > { %1087 = vrot.lane.b32.xlu1 %v1501_v20, %s1692_s20  ;;  %v1068_v21 = vpop.f32.mrb[23].mxu0 }
 0x354   : > { %1085 = vrot.lane.b32.xlu0 %v1068_v21, %s1692_s20 }
 0x357   : > { %1142 = vrot.lane.b32.xlu1 %v1604_v34, %s1692_s20 }
 0x358   : > { %1103 = vrot.lane.b32.xlu0 %v1362_v33, %s1692_s20 }
 0x35b   : > { %1146 = vrot.lane.b32.xlu1 %v1606_v35, %s1692_s20 }
 0x35c   : > { %1144 = vrot.lane.b32.xlu0 %v1608_v36, %s1692_s20 }
 0x35f   : > { %1162 = vrot.lane.b32.xlu1 %v1814_v9, %s1692_s20 }
 0x360   : > { %1148 = vrot.lane.b32.xlu0 %v1610_v37, %s1692_s20 }
 0x363   : > { %1166 = vrot.lane.b32.xlu1 %v1820_v12, %s1692_s20 }
 0x364   : > { %1164 = vrot.lane.b32.xlu0 %v1816_v10, %s1692_s20 }
 0x368   : > { %1168 = vrot.lane.b32.xlu0 %v1826_v15, %s1692_s20  ;;  %s1695_s20 = smov 96  }
 0x3c1   : > { %v1084_v38 = vpop.permute.xlu1 %1083 }
 0x3c2   : > { %v1082_v39 = vpop.permute.xlu0 %1081  ;;  %v1094_v42 = vadd.f32 %v1898_v11, %v1084_v38 }
 0x3c3   : > { %v1093_v43 = vadd.f32 %v1082_v39, %v1900_v13 }
 0x3c5   : > { %v1088_v40 = vpop.permute.xlu1 %1087 }
 0x3c6   : > { %v1086_v41 = vpop.permute.xlu0 %1085  ;;  %v1096_v9 = vadd.f32 %v1902_v14, %v1088_v40 }
 0x3c7   : > { %v1095_v44 = vadd.f32 %v1086_v41, %v1904_v16 }
 0x3c9   : > { %v1143_v11 = vpop.permute.xlu1 %1142 }
 0x3ca   : > { %v1104_v45 = vpop.permute.xlu0 %1103 }
 0x3cb   : > { %v1106_v12 = vadd.f32 %v1104_v45, %v1093_v43  ;;  %v1107_v46 = vadd.f32 %v1104_v45, %v1094_v42  ;;  %v1108_v47 = vadd.f32 %v1104_v45, %v1095_v44  ;;  %v1109_v10 = vadd.f32 %v1104_v45, %v1096_v9 }
 0x3cd   : > { %v1363_v48 = vmul.f32 -1.442695, %v1106_v12  ;;  %v1364_v49 = vmul.f32 -1.442695, %v1107_v46  ;;  %v1365_v15 = vmul.f32 -1.442695, %v1108_v47  ;;  %v1147_v57 = vpop.permute.xlu1 %1146 }
 0x3ce   : > { %v1366_v50 = vmul.f32 -1.442695, %v1109_v10  ;;  %v1145_v13 = vpop.permute.xlu0 %1144 }
 0x3cf   : > { %1611 = vpow2.f32 %v1363_v48 }
 0x3d0   : > { %1613 = vpow2.f32 %v1364_v49 }
 0x3d1   : > { %1615 = vpow2.f32 %v1365_v15  ;;  %v1163_v59 = vpop.permute.xlu1 %1162 }
 0x3d2   : > { %1617 = vpow2.f32 %v1366_v50  ;;  %v1149_v58 = vpop.permute.xlu0 %1148 }
 0x3d5   : > { %v1167_v2 = vpop.permute.xlu1 %1166 }
 0x3d6   : > { %v1165_v60 = vpop.permute.xlu0 %1164 }
 0x3d9   : > { %v1612_v51 = vpop.eup %1611 }
 0x3da   : > { %v1614_v52 = vpop.eup %1613  ;;  %v1122_v14 = vadd.f32 1.0, %v1612_v51  ;;  %v1169_v7 = vpop.permute.xlu0 %1168 }
 0x3db   : > { %v1616_v53 = vpop.eup %1615  ;;  %v1123_v16 = vadd.f32 1.0, %v1614_v52 }
 0x3dc   : > { %v1618_v54 = vpop.eup %1617  ;;  %v1124_v55 = vadd.f32 1.0, %v1616_v53  ;;  %1619 = vrcp.f32 %v1122_v14 }
 0x3dd   : > { %v1125_v56 = vadd.f32 1.0, %v1618_v54  ;;  %1621 = vrcp.f32 %v1123_v16 }
 0x3de   : > { %1623 = vrcp.f32 %v1124_v55 }
 0x3df   : > { %1625 = vrcp.f32 %v1125_v56 }
 0x3e6   : > { %v1620_v61 = vpop.eup %1619 }
 0x3e7   : > { %v1622_v62 = vpop.eup %1621  ;;  %v1158_v63 = vsub.f32 1.0, %v1620_v61  ;;  %v1154_v4 = vmul.f32 %v1620_v61, %v1143_v11 }
 0x3e8   : > { %v1624_v0 = vpop.eup %1623  ;;  %v1159_v1 = vsub.f32 1.0, %v1622_v62  ;;  %v1155_v8 = vmul.f32 %v1622_v62, %v1145_v13 }
 0x3e9   : > { %v1626_v3 = vpop.eup %1625  ;;  %v1174_v5 = vmul.f32 %v1163_v59, %v1158_v63  ;;  %v1160_v6 = vsub.f32 1.0, %v1624_v0  ;;  %v1156_v27 = vmul.f32 %v1624_v0, %v1147_v57 }
 0x3ea   : > { %v1175_v22 = vmul.f32 %v1165_v60, %v1159_v1  ;;  %v1161_v17 = vsub.f32 1.0, %v1626_v3  ;;  %v1157_v28 = vmul.f32 %v1626_v3, %v1149_v58 }
 0x3eb   : > { %v1178_v23 = vadd.f32 %v1174_v5, %v1154_v4  ;;  %v1176_v24 = vmul.f32 %v1167_v2, %v1160_v6 }
 0x3ec   : > { %v1179_v25 = vadd.f32 %v1175_v22, %v1155_v8  ;;  %v1177_v26 = vmul.f32 %v1169_v7, %v1161_v17 }
 0x3ed   : > { %1186 = vrot.lane.b32.xlu1 %v1178_v23, %s1695_s20  ;;  %v1180_v29 = vadd.f32 %v1176_v24, %v1156_v27 }
 0x3ee   : > { %1188 = vrot.lane.b32.xlu0 %v1179_v25, %s1695_s20  ;;  %v1181_v30 = vadd.f32 %v1177_v26, %v1157_v28 }
 0x3f1   : > { %1190 = vrot.lane.b32.xlu1 %v1180_v29, %s1695_s20 }
 0x3f2   : > { %1192 = vrot.lane.b32.xlu0 %v1181_v30, %s1695_s20 }
 0x45f   : > { %v1187_v31 = vpop.permute.xlu1 %1186 }
 0x460   : > { %1198 = vst.msk [vmem:[%s337_s21] sm:$0xff] %vm373_vm0, %v1187_v31  ;;  %v1189_v32 = vpop.permute.xlu0 %1188 }
 0x461   : > { %1199 = vst.msk [vmem:[%s337_s21 + $0x8] sm:$0xff] %vm373_vm0, %v1189_v32 }
 0x463   : > { %v1191_v18 = vpop.permute.xlu1 %1190 }
 0x464   : > { %1200 = vst.msk [vmem:[%s337_s21 + $0x10] sm:$0xff] %vm373_vm0, %v1191_v18  ;;  %v1193_v19 = vpop.permute.xlu0 %1192 }
 0x465   : > { %1201 = vst.msk [vmem:[%s337_s21 + $0x18] sm:$0xff] %vm373_vm0, %v1193_v19 }
 0x466   : > { %1640 = shalt.err (!%p1637_p3)
}
 0x467   : > { %s1641_s20 = scalar_lea.hbm %s2002_s26, 512  ;;  %s1645_s21 = scalar_lea.hbm %s2055_s8, 1024 }
 0x468   : > { %p1642_p4 = scmp.ne.s32.totalorder %s2002_s26, %s1641_s20  ;;  %p1646_p9 = scmp.lt.u32.totalorder %s2002_s26, %s2055_s8 }
 0x469   : > { %p1647_p10 = scmp.lt.u32.totalorder %s1645_s21, %s1641_s20  ;;  %p1649_p12 = scmp.lt.u32.totalorder %s1641_s20, %s2002_s26 }
 0x46a   : > { %p1643_p7 = pnand %p1642_p4, %p1782_p5 }
 0x46b   : > { %p1648_p11 = por %p1647_p10, %p1646_p9 }
 0x46c   : > { %p1644_p8 = pneg %p1643_p7 }
 0x46d   : > { %p1650_p13 = por %p1649_p12, %p1648_p11 }
 0x46f   : > { %p1651_p0 = pnand %p1650_p13, %p1644_p8 }
 0x471   : > { %1654 = shalt.err (!%p1651_p0)
}
 0x472   : > { %s1697_s23 = smov 128   ;;  %s1698_s9 = smov 8  }
 0x473   : > { %1536 = dma.vmem_to_hbm [thread:$0]  (%p1782_p5), %s1997_s22, 512, %s2002_s26, %s2006_s10, %s1697_s23, %s1697_s23, %s1698_s9  }
 0x474 PF: > { %p1542_p1 = scmp.ge.s32.totalorder %s1689_s30, 2  ;;  %s1232_s12 = sand.u32 1, %s1677_s27  }
 0x475   : > { %s1233_s13 = scalar_lea.sflag [#allocation3], %s1232_s12 }
 0x476   : > { %p1539_p2 = pnand %p1542_p1, %p1786_p6 }
 0x478   : > { %1672 = dma.done.wait (!%p1539_p2), %s1233_s13, 512  }
 0x479   : > { %1674 = vsyncadd (!%p1539_p2), %s1233_s13, 4294966784  ;;  %p18_p3 = scmp.ge.s32.totalorder %s1769_s11, 4   ;;  %s2058_s27 = smov %s1681_s28 }
 0x47a   : > { %s2059_s28 = smov %s1685_s29  ;;  %s2060_s29 = smov %s1780_s14 }
 0x47b   : > { %s2061_s30 = smov %s1769_s11  ;;  %20 = sbr.rel (!%p18_p3) target bundleno = 3 (0x3), region = 95 }
 0x482   :  { %1238 = vsyncpa [#allocation3], 1 }
 0x483   :  { %1240 = vsyncpa [#allocation3 + $0x1], 1 }

</bundles_post_ra>
